<compile_context>
chip_gen: v5e
topology: v5e:2x2
jax: 0.10.0
libtpu: 0.0.40
codegen_flags: <defaults>
</compile_context>

<pallas_src>
import functools

import jax
import jax.numpy as jnp
from jax.experimental import pallas as pl
from jax.experimental.pallas import tpu as pltpu


# ----------------------------- helpers ------------------------------------- #

def _vmem_limit_bytes():
    """Scoped-VMEM limit: generous on 128 MiB parts (v5e/v6e), capped on v7x."""
    try:
        cap = pltpu.get_tpu_info().vmem_capacity_bytes
    except Exception:
        cap = 64 * 1024 * 1024
    return int(min(96 * 1024 * 1024, cap * 3 // 4))


def _pick_tile(dim, target, align):
    """Largest tile <= target that divides `dim` and is a multiple of `align`;
    falls back to the full dim (always legal for the last-two block dims)."""
    if dim <= target:
        return dim
    t = (target // align) * align
    while t >= align:
        if dim % t == 0:
            return t
        t -= align
    return dim


# ----------------------------- matmul kernels ------------------------------ #

def _matmul_kernel(x_ref, w_ref, o_ref):
    # Single K step: whole reduction in one MXU pass, direct store, no scratch.
    o_ref[...] = jnp.dot(x_ref[...], w_ref[...],
                         preferred_element_type=jnp.float32).astype(o_ref.dtype)


def _matmul_bias_kernel(x_ref, w_ref, b_ref, o_ref):
    acc = jnp.dot(x_ref[...], w_ref[...], preferred_element_type=jnp.float32)
    o_ref[...] = (acc + b_ref[...].astype(jnp.float32)).astype(o_ref.dtype)


def _matmul_acc_kernel(x_ref, w_ref, o_ref, acc_ref):
    # Multi-step K reduction with an f32 VMEM accumulator.
    @pl.when(pl.program_id(2) == 0)
    def _():
        acc_ref[...] = jnp.zeros_like(acc_ref)

    acc_ref[...] += jnp.dot(x_ref[...], w_ref[...],
                            preferred_element_type=jnp.float32)

    @pl.when(pl.program_id(2) == pl.num_programs(2) - 1)
    def _():
        o_ref[...] = acc_ref[...].astype(o_ref.dtype)


def _matmul_bias_acc_kernel(x_ref, w_ref, b_ref, o_ref, acc_ref):
    @pl.when(pl.program_id(2) == 0)
    def _():
        acc_ref[...] = jnp.zeros_like(acc_ref)

    acc_ref[...] += jnp.dot(x_ref[...], w_ref[...],
                            preferred_element_type=jnp.float32)

    @pl.when(pl.program_id(2) == pl.num_programs(2) - 1)
    def _():
        o_ref[...] = (acc_ref[...]
                      + b_ref[...].astype(jnp.float32)).astype(o_ref.dtype)


def _pallas_matmul(x, w, bias=None, *, tm=512, tn=512, tk=1024):
    """Tiled x @ w (+ bias) with f32 accumulation on the MXU."""
    M, K = x.shape
    K2, N = w.shape
    assert K == K2, (x.shape, w.shape)

    # Pad rows to a sublane multiple so ragged M (e.g. B*197) never forces one
    # giant fallback tile.
    pad_m = (-M) % 8
    if pad_m:
        x = jnp.pad(x, ((0, pad_m), (0, 0)))
    Mp = M + pad_m

    bm = _pick_tile(Mp, tm, 8)
    bn = _pick_tile(N, tn, 128)
    bk = _pick_tile(K, tk, 128)          # tk >= typical ViT C: single K step
    grid = (Mp // bm, N // bn, K // bk)
    single_k = grid[2] == 1

    itemsize = jnp.dtype(x.dtype).itemsize
    cost = pl.CostEstimate(
        flops=2 * M * N * K,
        transcendentals=0,
        bytes_accessed=int((M * K + K * N + M * N) * itemsize),
    )
    cparams = pltpu.CompilerParams(
        dimension_semantics=("parallel", "parallel", "arbitrary"),
        vmem_limit_bytes=_vmem_limit_bytes(),
    )

    x_spec = pl.BlockSpec((bm, bk), lambda i, j, k: (i, k))
    w_spec = pl.BlockSpec((bk, bn), lambda i, j, k: (k, j))
    o_spec = pl.BlockSpec((bm, bn), lambda i, j, k: (i, j))
    out_shape = jax.ShapeDtypeStruct((Mp, N), x.dtype)
    scratch = [] if single_k else [pltpu.VMEM((bm, bn), jnp.float32)]

    if bias is None:
        kernel = _matmul_kernel if single_k else _matmul_acc_kernel
        out = pl.pallas_call(
            kernel, out_shape=out_shape, grid=grid,
            in_specs=[x_spec, w_spec], out_specs=o_spec,
            scratch_shapes=scratch, compiler_params=cparams, cost_estimate=cost,
        )(x, w)
    else:
        b_spec = pl.BlockSpec((1, bn), lambda i, j, k: (0, j))
        kernel = _matmul_bias_kernel if single_k else _matmul_bias_acc_kernel
        out = pl.pallas_call(
            kernel, out_shape=out_shape, grid=grid,
            in_specs=[x_spec, w_spec, b_spec], out_specs=o_spec,
            scratch_shapes=scratch, compiler_params=cparams, cost_estimate=cost,
        )(x, w, bias.reshape(1, N))

    return out[:M] if pad_m else out


# ----------------------------- attention kernel ----------------------------- #

def _attention_kernel(qkv_ref, o_ref, *, num_heads, head_dim):
    # qkv_ref: (1, N, 3C) lane-dense block for one batch element; the Q columns
    #          are already scaled by 1/sqrt(D) (folded into the QKV weight).
    # o_ref:   (1, N, C) lane-dense block -> one unmasked full-width store.
    H, D = num_heads, head_dim
    C = H * D
    qkv = qkv_ref[0]                                   # (N, 3C)
    N = qkv.shape[0]

    # Static contiguous lane slices for q/k/v; one relayout each to put the
    # head axis leading for the batched MXU matmuls.
    q = pltpu.einshape("nhd->hnd", qkv[:, 0 * C:1 * C].reshape(N, H, D))   # (H,N,D)
    k = pltpu.einshape("nhd->hnd", qkv[:, 1 * C:2 * C].reshape(N, H, D))   # (H,N,D)
    v = pltpu.einshape("nhd->hnd", qkv[:, 2 * C:3 * C].reshape(N, H, D))   # (H,N,D)

    # Batched q @ k^T over the head axis (contract D); f32 scores.
    s = jnp.einsum("hqd,hkd->hqk", q, k, preferred_element_type=jnp.float32)
    s = s - jnp.max(s, axis=-1, keepdims=True)
    p = jnp.exp(s)
    p = p * pl.reciprocal(jnp.sum(p, axis=-1, keepdims=True), approx=True)

    # Batched p @ v over the head axis (contract keys).
    o = jnp.einsum("hqk,hkd->hqd", p.astype(v.dtype), v,
                   preferred_element_type=jnp.float32)                      # (H,N,D)

    # One relayout back to (N, C) and a single lane-dense store per grid step.
    o_ref[0] = pltpu.einshape("hnd->nhd", o).reshape(N, C).astype(o_ref.dtype)


def _pallas_attention(qkv, num_heads, out_dtype):
    """softmax(q k^T) @ v for all heads of one batch element per grid step.

    qkv: (B, N, 3C) lane-dense activation straight out of the QKV projection;
    output (B, N, C) is already in the layout the output projection consumes.
    """
    # TODO(synk): for long sequences (and v7x's 64 MiB VMEM) switch to a
    # flash-style KV-tiled grid=(B, H, N_kv/t) loop; at ViT-scale N the full
    # per-batch (H, N, N) score tensor fits comfortably in VMEM.
    B, N, C3 = qkv.shape
    C = C3 // 3
    H = num_heads
    D = C // H
    itemsize = jnp.dtype(qkv.dtype).itemsize

    cost = pl.CostEstimate(
        flops=4 * B * H * N * N * D,                  # q@k^T and p@v
        transcendentals=B * H * N * N,                # exp
        bytes_accessed=int((B * N * C3 + B * N * C) * itemsize),
    )

    return pl.pallas_call(
        functools.partial(_attention_kernel, num_heads=H, head_dim=D),
        out_shape=jax.ShapeDtypeStruct((B, N, C), out_dtype),
        grid=(B,),
        in_specs=[pl.BlockSpec((1, N, C3), lambda b: (b, 0, 0))],   # one DMA/step
        out_specs=pl.BlockSpec((1, N, C), lambda b: (b, 0, 0)),
        compiler_params=pltpu.CompilerParams(
            dimension_semantics=("parallel",),
            vmem_limit_bytes=_vmem_limit_bytes(),
        ),
        cost_estimate=cost,
    )(qkv)


# ----------------------------- forward / params ----------------------------- #

def attention_forward(x, kparams, num_heads):
    """Forward pass matching the PyTorch Attention module (eval / dropout=0)."""
    B, N, C = x.shape

    # qkv = self.qkv(x)   (qkv_bias=False); weight pre-transposed, Q pre-scaled.
    qkv = _pallas_matmul(x.reshape(B * N, C), kparams["w_qkv"])      # (B*N, 3C)
    qkv = qkv.reshape(B, N, 3 * C)                                   # free reshape

    # Fused multi-head attention; output already in (B, N, C) layout.
    out = _pallas_attention(qkv, num_heads, x.dtype)                 # (B, N, C)

    # x = self.proj(x)  (with bias); weight pre-transposed to (C, C).
    out = _pallas_matmul(out.reshape(B * N, C), kparams["w_proj"], kparams["b_proj"])
    # TODO(synk): attn_drop / proj_drop are p=0.0 (module defaults) -> identity.
    return out.reshape(B, N, C)


def init_params(key, dim):
    """Raw parameters in PyTorch nn.Linear layout (out_features, in_features)."""
    k1, k2, k3 = jax.random.split(key, 3)
    bound = 1.0 / (dim ** 0.5)
    w_qkv = jax.random.uniform(k1, (3 * dim, dim), jnp.float32, -bound, bound)
    w_proj = jax.random.uniform(k2, (dim, dim), jnp.float32, -bound, bound)
    b_proj = jax.random.uniform(k3, (dim,), jnp.float32, -bound, bound)
    return {"w_qkv": w_qkv, "w_proj": w_proj, "b_proj": b_proj}


def prepare_kernel_params(params, dim, num_heads, qk_scale=None):
    """One-time prep: transpose weights to (in, out) and fold the softmax scale
    into the Q columns of the QKV weight (so the kernel never re-scales)."""
    scale = qk_scale or (dim // num_heads) ** (-0.5)
    w_qkv = params["w_qkv"].T                      # (C, 3C)
    w_qkv = w_qkv.at[:, :dim].multiply(scale)      # scale the Q output columns
    return {"w_qkv": w_qkv, "w_proj": params["w_proj"].T, "b_proj": params["b_proj"]}


def reference_forward(x, params, num_heads):
    """Plain-JAX reference (same math as the PyTorch module), f32-exact matmuls."""
    B, N, C = x.shape
    H = num_heads
    D = C // H
    scale = D ** (-0.5)
    hp = jax.lax.Precision.HIGHEST
    qkv = jnp.matmul(x, params["w_qkv"].T, precision=hp)             # (B, N, 3C)
    qkv = qkv.reshape(B, N, 3, H, D).transpose(2, 0, 3, 1, 4)
    q, k, v = qkv[0], qkv[1], qkv[2]
    attn = jnp.matmul(q, jnp.swapaxes(k, -2, -1), precision=hp) * scale
    attn = jax.nn.softmax(attn, axis=-1)
    out = jnp.matmul(attn, v, precision=hp).transpose(0, 2, 1, 3).reshape(B, N, C)
    return jnp.matmul(out, params["w_proj"].T, precision=hp) + params["b_proj"]


if __name__ == "__main__":
    key = jax.random.PRNGKey(0)
    kx, kp = jax.random.split(key)

    B, N, C = 2, 16, 512
    num_heads = 4          # head_dim = 128: full-lane heads

    x = jax.random.normal(kx, (B, N, C), jnp.float32)
    params = init_params(kp, C)
    kparams = prepare_kernel_params(params, C, num_heads)

    out = jax.block_until_ready(attention_forward(x, kparams, num_heads))
    ref = reference_forward(x, params, num_heads)

    assert out.shape == (B, N, C)
    # Approximate EUP reciprocal in the softmax -> slightly looser tolerance.
    assert jnp.allclose(out, ref, atol=2e-3, rtol=2e-3), "mismatch vs reference"

    print("KERNEL_OK")
</pallas_src>

<mosaic_0001>
module attributes {stable_mosaic.version = 11 : i64} {
  func.func @_matmul_kernel(%arg0: i32, %arg1: i32, %arg2: i32, %arg3: memref<32x512xf32, #tpu.memory_space<vmem>>, %arg4: memref<512x512xf32, #tpu.memory_space<vmem>>, %arg5: memref<32x512xf32, #tpu.memory_space<vmem>>) attributes {dimension_semantics = [#tpu.dimension_semantics<parallel>, #tpu.dimension_semantics<parallel>, #tpu.dimension_semantics<arbitrary>], iteration_bounds = array<i64: 1, 3, 1>, scalar_prefetch = 0 : i64, scratch_operands = 0 : i64, tpu.core_type = #tpu.core_type<tc>, window_params = [{transform_indices = @transform_0, window_bounds = array<i64: 32, 512>}, {transform_indices = @transform_1, window_bounds = array<i64: 512, 512>}, {transform_indices = @transform_2, window_bounds = array<i64: 32, 512>}]} {
    %c0 = arith.constant 0 : index
    %c0_0 = arith.constant 0 : index
    %0 = vector.load %arg3[%c0, %c0_0] : memref<32x512xf32, #tpu.memory_space<vmem>>, vector<32x512xf32>
    %c0_1 = arith.constant 0 : index
    %c0_2 = arith.constant 0 : index
    %1 = vector.load %arg4[%c0_1, %c0_2] : memref<512x512xf32, #tpu.memory_space<vmem>>, vector<512x512xf32>
    %cst = arith.constant dense<0.000000e+00> : vector<32x512xf32>
    %2 = tpu.matmul %0, %1, %cst {dimension_numbers = #tpu.dot_dimension_numbers<[1], [0], [0], [1], [0, 0, 1, 1], [], []>} : vector<32x512xf32>, vector<512x512xf32>, vector<32x512xf32> -> vector<32x512xf32>
    %c0_3 = arith.constant 0 : index
    %c0_4 = arith.constant 0 : index
    %3 = vector.load %arg5[%c0_3, %c0_4] : memref<32x512xf32, #tpu.memory_space<vmem>>, vector<32x512xf32>
    tpu.vector_store %arg5[%c0_3, %c0_4], %2 {strides = array<i32>} : memref<32x512xf32, #tpu.memory_space<vmem>>, vector<32x512xf32>,
    return
  }
  func.func @transform_0(%arg0: i32, %arg1: i32, %arg2: i32) -> (i32, i32) {
    %c0_i32 = arith.constant 0 : i32
    return %arg0, %arg2 : i32, i32
  }
  func.func @transform_1(%arg0: i32, %arg1: i32, %arg2: i32) -> (i32, i32) {
    %c0_i32 = arith.constant 0 : i32
    return %arg2, %arg1 : i32, i32
  }
  func.func @transform_2(%arg0: i32, %arg1: i32, %arg2: i32) -> (i32, i32) {
    %c0_i32 = arith.constant 0 : i32
    return %arg0, %arg1 : i32, i32
  }
}

</mosaic_0001>

<bundles_post_ra>
// kernel: tpu_custom_call.1
= control target key start
LH: loop header
LB: loop body
LE: loop exit
PB: predicated region body
PF: predicated region fallthrough
CT: control target
= control target key end

     0   :  { %7 = vsyncpa [#allocation3], 0  ;;  %s1898_s0 = inlined_call_operand.hbm [shape: f32[32,512], index: 0, kind: input, shape index: {}]   ;;  %s1899_s1 = inlined_call_operand.hbm [shape: f32[512,1536], index: 1, kind: input, shape index: {}]   ;;  %s1900_s2 = inlined_call_operand.hbm [shape: f32[32,1536], index: 2, kind: output, shape index: {}]  }
   0x1   :  { %8 = vsyncpa [#allocation6], 0 }
   0x2   :  { %10 = vsyncpa [#allocation6 + $0x1], 0 }
   0x3   :  { %11 = vsyncpa [#allocation4], 0 }
   0x4   :  { %13 = vsyncpa [#allocation4 + $0x1], 0  ;;  %s1372_s9 = smov 0   ;;  %s1374_s10 = smov 0  }
   0x5   :  { %s1376_s11 = smov 0   ;;  %s1378_s12 = smov 0  }
   0x6   :  { %s1380_s13 = smov 0   ;;  %s1382_s14 = smov 0  }
   0x7 LB: > { %s1104_s15 = sadd.s32 4294967295, %s1348_s14   ;;  %s1105_s16 = sadd.s32 4294967294, %s1348_s14   ;;  %s1348_s14 = sphi %s1382_s14, %s19_s14   ;;  %s1344_s13 = sphi %s1380_s13, %s1914_s13   ;;  %s1340_s12 = sphi %s1378_s12, %s1913_s12   ;;  %s1336_s11 = sphi %s1376_s11, %s1912_s11   ;;  %s1332_s10 = sphi %s1374_s10, %s1911_s10   ;;  %s1328_s9 = sphi %s1372_s9, %s1910_s9  }
   0x8   : > { %p88_p0 = scmp.ne.s32.totalorder %s1332_s10, %s1328_s9  ;;  %p1406_p1 = scmp.eq.s32.totalorder %s1104_s15, 0 }
   0x9   : > { %p1410_p2 = scmp.eq.s32.totalorder %s1104_s15, 2  ;;  %p120_p3 = scmp.eq.s32.totalorder %s1105_s16, 2 }
   0xa   : > { %p1416_p4 = por %p1406_p1, %p88_p0  ;;  %p1106_p5 = scmp.ge.s32.totalorder %s1348_s14, 1 }
   0xb   : > { %p1421_p6 = por %p120_p3, %p88_p0  ;;  %p127_p7 = scmp.lt.s32.totalorder %s1348_s14, 4 }
   0xc   : > { %s144_s23 = sshll.u32 %s1898_s0, 4  ;;  %s1350_s25 = smov [#allocation2]   ;;  %s145_s23 = int_to_ptr.hbm [resolvable:$true] %s144_s23 }
   0xd   : > { %p1429_p8 = pnand %p1106_p5, %p127_p7  ;;  %s146_s26 = sshll.u32 %s1350_s25, 4  ;;  %s147_s26 = int_to_ptr.vmem [resolvable:$true] %s146_s26 }
   0xe   : > { %s1901_s27 = smov 512   ;;  %s1352_s28 = smov 32  }
   0xf   : > { %p1131_p9 = pneg %p1429_p8  ;;  %s34_s29 = sadd.s32 1, %s1344_s13 }
  0x10   : > { %p36_p11 = scmp.ge.s32.totalorder %s34_s29, 3  ;;  %s75_s30 = sadd.s32 1, %s1336_s11 }
  0x11   : > { %p1132_p10 = pnand %p1131_p9, %p1406_p1  ;;  %p82_p12 = scmp.ne.s32.totalorder %s1336_s11, %s1332_s10 }
  0x12   : > { %p83_p13 = scmp.eq.s32.totalorder %s1348_s14, 0  ;;  %s1916_s29 = smov (%p36_p11, %s34_s29), 0 }
  0x13   : > { %1134 = dma.hbm_to_vmem [thread:$0]  (!%p1132_p10), %s145_s23, 2048, %s147_s26, [#allocation3], %s1901_s27, %s1901_s27, %s1352_s28  }
  0x14   : > { %p1447_p0 = por %p83_p13, %p82_p12  ;;  %p1453_p3 = por %p1410_p2, %p82_p12 }
  0x15   : > { %s71_s5 = ssub.s32 %s1344_s13, %s1916_s29  ;;  %p1144_p5 = scmp.lt.s32.totalorder %s1348_s14, 3 }
  0x16   : > { %p73_p7 = scmp.eq.s32.totalorder %s71_s5, 0  ;;  %s160_s6 = sand.u32 1, %s1336_s11  }
  0x17   : > { %s1109_s7 = sshll.u32 %s160_s6, 11  ;;  %s1121_s15 = sshll.u32 %s1344_s13, 5 }
  0x18   : > { %s1462_s8 = scalar_select %p73_p7, %s1336_s11, %s75_s30  }
  0x19   : > { %s172_s22 = scalar_lea.hbm %s1899_s1, %s1121_s15  ;;  %s164_s23 = scalar_lea.vmem [#allocation5], %s1109_s7 }
  0x1a   : > { %s175_s25 = sshll.u32 %s164_s23, 4  ;;  %s173_s18 = sshll.u32 %s172_s22, 4  ;;  %s176_s25 = int_to_ptr.vmem [resolvable:$true] %s175_s25  ;;  %s174_s18 = int_to_ptr.hbm [resolvable:$true] %s173_s18 }
  0x1b   : > { %p1136_p2 = pnand %p1144_p5, %p1447_p0  ;;  %s161_s26 = scalar_lea.sflag [#allocation6], %s160_s6 }
  0x1c   : > { %s1353_s27 = smov 1536   ;;  %s1909_s5 = smov 512  }
  0x1d   : > { %1138 = dma.hbm_to_vmem [thread:$0]  (!%p1136_p2), %s174_s18, 32768, %s176_s25, %s161_s26, %s1353_s27, %s1909_s5, %s1352_s28  }
  0x1e   : > { %187 = sbr.rel (%p1429_p8) target bundleno = 387 (0x183), region = 28 }
  0x23   : > { %1315 = dma.done.wait (%p1406_p1), [#allocation3], 2048  }
  0x24   : > { %1317 = vsyncadd (%p1406_p1), [#allocation3], 4294965248  ;;  %s1479_s30 = sand.u32 1, %s1332_s10  }
  0x25   : > { %s1114_s3 = sshll.u32 %s1479_s30, 11  ;;  %s195_s6 = scalar_lea.sflag [#allocation6], %s1479_s30 }
  0x26   : > { %s1483_s7 = scalar_lea.vmem [#allocation5], %s1114_s3 }
  0x27   : > { %1319 = dma.done.wait (%p1416_p4), %s195_s6, 32768  }
  0x28   : > { %1321 = vsyncadd (%p1416_p4), %s195_s6, 4294934528  ;;  %v430_v0 = vld [vmem:[%s1483_s7 + $0x5e0] sm:$0xff]  ;;  %v1551_v62 = vld [vmem:[#allocation2 + $0x10] sm:$0xff]  ;;  %s1115_s17 = sshll.u32 %s1479_s30, 7  ;;  %s1122_s24 = sshll.u32 %s1340_s12, 5 }
  0x29   : > { %v426_v1 = vld [vmem:[%s1483_s7 + $0x5c0] sm:$0xff]  ;;  %556 = vmatpush.msra.mxu2 %v430_v0  ;;  %v1553_v63 = vld [vmem:[#allocation2 + $0x18] sm:$0xff]  ;;  %v431_v0 = vld [vmem:[%s1483_s7 + $0x5e8] sm:$0xff]  ;;  %s1835_s19 = scalar_lea.vmem [#allocation7], %s1115_s17  ;;  %s993_s15 = scalar_lea.hbm %s1900_s2, %s1122_s24 }
  0x2a   : > { %v494_v2 = vld [vmem:[%s1483_s7 + $0x7e0] sm:$0xff]  ;;  %s994_s16 = sshll.u32 %s1835_s19, 4  ;;  %s996_s21 = sshll.u32 %s993_s15, 4  ;;  %s995_s16 = int_to_ptr.vmem [resolvable:$true] %s994_s16  ;;  %s997_s21 = int_to_ptr.hbm [resolvable:$true] %s996_s21 }
  0x2b   : > { %585 = vmatpush.msra.mxu3 %v494_v2  ;;  %v302_v3 = vld [vmem:[%s1483_s7 + $0x1e0] sm:$0xff]  ;;  %557 = vmatpush.msra.mxu2 %v426_v1  ;;  %v495_v1 = vld [vmem:[%s1483_s7 + $0x7e8] sm:$0xff]  ;;  %s979_s12 = scalar_lea.sflag [#allocation4], %s1479_s30  ;;  %s1276_s22 = sshra.s32 %s997_s21, 4  ;;  %s1277_s22 = int_to_ptr.hbm [resolvable:$true] %s1276_s22 }
  0x2c   : > { %v366_v4 = vld [vmem:[%s1483_s7 + $0x3e0] sm:$0xff]  ;;  %498 = vmatpush.msra.mxu0 %v302_v3  ;;  %s1278_s23 = scalar_lea.hbm %s1277_s22, 128  ;;  %s1282_s26 = scalar_lea.hbm %s1900_s2, 384 }
  0x2d   : > { %v422_v5 = vld [vmem:[%s1483_s7 + $0x5a0] sm:$0xff]  ;;  %527 = vmatpush.msra.mxu1 %v366_v4  ;;  %v427_v4 = vld [vmem:[%s1483_s7 + $0x5c8] sm:$0xff]  ;;  %p1279_p1 = scmp.ne.s32.totalorder %s1277_s22, %s1278_s23  ;;  %p1283_p9 = scmp.lt.s32.totalorder %s1277_s22, %s1900_s2 }
  0x2e   : > { %v490_v6 = vld [vmem:[%s1483_s7 + $0x7c0] sm:$0xff]  ;;  %558 = vmatpush.msra.mxu2 %v422_v5  ;;  %p1284_p10 = scmp.lt.s32.totalorder %s1282_s26, %s1278_s23 }
  0x2f   : > { %v298_v7 = vld [vmem:[%s1483_s7 + $0x1c0] sm:$0xff]  ;;  %586 = vmatpush.msra.mxu3 %v490_v6  ;;  %v1564_v6 = vld [vmem:[#allocation2 + $0x8] sm:$0xff]  ;;  %p1280_p4 = pnand %p1279_p1, %p1453_p3 }
  0x30   : > { %v362_v8 = vld [vmem:[%s1483_s7 + $0x3c0] sm:$0xff]  ;;  %499 = vmatpush.msra.mxu0 %v298_v7  ;;  %v303_v7 = vld [vmem:[%s1483_s7 + $0x1e8] sm:$0xff]  ;;  %p1285_p11 = por %p1284_p10, %p1283_p9 }
  0x31   : > { %v486_v9 = vld [vmem:[%s1483_s7 + $0x7a0] sm:$0xff]  ;;  %528 = vmatpush.msra.mxu1 %v362_v8  ;;  %v367_v8 = vld [vmem:[%s1483_s7 + $0x3e8] sm:$0xff]  ;;  %p1281_p8 = pneg %p1280_p4 }
  0x32   : > { %v294_v10 = vld [vmem:[%s1483_s7 + $0x1a0] sm:$0xff]  ;;  %587 = vmatpush.msra.mxu3 %v486_v9  ;;  %v423_v9 = vld [vmem:[%s1483_s7 + $0x5a8] sm:$0xff] }
  0x33   : > { %v418_v11 = vld [vmem:[%s1483_s7 + $0x580] sm:$0xff]  ;;  %500 = vmatpush.msra.mxu0 %v294_v10  ;;  %v491_v10 = vld [vmem:[%s1483_s7 + $0x7c8] sm:$0xff]  ;;  %p1286_p12 = pnand %p1285_p11, %p1281_p8 }
  0x34   : > { %v358_v12 = vld [vmem:[%s1483_s7 + $0x3a0] sm:$0xff]  ;;  %559 = vmatpush.msra.mxu2 %v418_v11  ;;  %v299_v11 = vld [vmem:[%s1483_s7 + $0x1c8] sm:$0xff] }
  0x35   : > { %v482_v13 = vld [vmem:[%s1483_s7 + $0x780] sm:$0xff]  ;;  %529 = vmatpush.msra.mxu1 %v358_v12  ;;  %v363_v12 = vld [vmem:[%s1483_s7 + $0x3c8] sm:$0xff] }
  0x36   : > { %v290_v14 = vld [vmem:[%s1483_s7 + $0x180] sm:$0xff]  ;;  %588 = vmatpush.msra.mxu3 %v482_v13  ;;  %v419_v13 = vld [vmem:[%s1483_s7 + $0x588] sm:$0xff] }
  0x37   : > { %v354_v15 = vld [vmem:[%s1483_s7 + $0x380] sm:$0xff]  ;;  %501 = vmatpush.msra.mxu0 %v290_v14  ;;  %v487_v14 = vld [vmem:[%s1483_s7 + $0x7a8] sm:$0xff] }
  0x38   : > { %v414_v16 = vld [vmem:[%s1483_s7 + $0x560] sm:$0xff]  ;;  %530 = vmatpush.msra.mxu1 %v354_v15  ;;  %v1576_v15 = vld [vmem:[#allocation2 + $0x30] sm:$0xff] }
  0x39   : > { %v478_v17 = vld [vmem:[%s1483_s7 + $0x760] sm:$0xff]  ;;  %560 = vmatpush.msra.mxu2 %v414_v16  ;;  %v295_v16 = vld [vmem:[%s1483_s7 + $0x1a8] sm:$0xff] }
  0x3a   : > { %v286_v18 = vld [vmem:[%s1483_s7 + $0x160] sm:$0xff]  ;;  %589 = vmatpush.msra.mxu3 %v478_v17  ;;  %v359_v17 = vld [vmem:[%s1483_s7 + $0x3a8] sm:$0xff] }
  0x3b   : > { %v350_v19 = vld [vmem:[%s1483_s7 + $0x360] sm:$0xff]  ;;  %502 = vmatpush.msra.mxu0 %v286_v18  ;;  %v415_v18 = vld [vmem:[%s1483_s7 + $0x568] sm:$0xff] }
  0x3c   : > { %v410_v20 = vld [vmem:[%s1483_s7 + $0x540] sm:$0xff]  ;;  %531 = vmatpush.msra.mxu1 %v350_v19  ;;  %v483_v19 = vld [vmem:[%s1483_s7 + $0x788] sm:$0xff] }
  0x3d   : > { %v474_v21 = vld [vmem:[%s1483_s7 + $0x740] sm:$0xff]  ;;  %561 = vmatpush.msra.mxu2 %v410_v20  ;;  %v1583_v20 = vld [vmem:[#allocation2 + $0x38] sm:$0xff] }
  0x3e   : > { %v282_v22 = vld [vmem:[%s1483_s7 + $0x140] sm:$0xff]  ;;  %590 = vmatpush.msra.mxu3 %v474_v21  ;;  %v291_v21 = vld [vmem:[%s1483_s7 + $0x188] sm:$0xff] }
  0x3f   : > { %v346_v23 = vld [vmem:[%s1483_s7 + $0x340] sm:$0xff]  ;;  %503 = vmatpush.msra.mxu0 %v282_v22  ;;  %v355_v22 = vld [vmem:[%s1483_s7 + $0x388] sm:$0xff] }
  0x40   : > { %v406_v24 = vld [vmem:[%s1483_s7 + $0x520] sm:$0xff]  ;;  %532 = vmatpush.msra.mxu1 %v346_v23  ;;  %v411_v23 = vld [vmem:[%s1483_s7 + $0x548] sm:$0xff] }
  0x41   : > { %v470_v25 = vld [vmem:[%s1483_s7 + $0x720] sm:$0xff]  ;;  %562 = vmatpush.msra.mxu2 %v406_v24  ;;  %v479_v24 = vld [vmem:[%s1483_s7 + $0x768] sm:$0xff] }
  0x42   : > { %v278_v26 = vld [vmem:[%s1483_s7 + $0x120] sm:$0xff]  ;;  %591 = vmatpush.msra.mxu3 %v470_v25 }
  0x43   : > { %v342_v27 = vld [vmem:[%s1483_s7 + $0x320] sm:$0xff]  ;;  %504 = vmatpush.msra.mxu0 %v278_v26  ;;  %v1592_v26 = vld [vmem:[#allocation2 + $0x28] sm:$0xff] }
  0x44   : > { %v402_v28 = vld [vmem:[%s1483_s7 + $0x500] sm:$0xff]  ;;  %533 = vmatpush.msra.mxu1 %v342_v27  ;;  %v287_v27 = vld [vmem:[%s1483_s7 + $0x168] sm:$0xff] }
  0x45   : > { %v466_v29 = vld [vmem:[%s1483_s7 + $0x700] sm:$0xff]  ;;  %563 = vmatpush.msra.mxu2 %v402_v28  ;;  %v351_v28 = vld [vmem:[%s1483_s7 + $0x368] sm:$0xff] }
  0x46   : > { %v274_v30 = vld [vmem:[%s1483_s7 + $0x100] sm:$0xff]  ;;  %592 = vmatpush.msra.mxu3 %v466_v29  ;;  %v407_v29 = vld [vmem:[%s1483_s7 + $0x528] sm:$0xff] }
  0x47   : > { %v338_v31 = vld [vmem:[%s1483_s7 + $0x300] sm:$0xff]  ;;  %505 = vmatpush.msra.mxu0 %v274_v30  ;;  %v475_v30 = vld [vmem:[%s1483_s7 + $0x748] sm:$0xff] }
  0x48   : > { %v398_v32 = vld [vmem:[%s1483_s7 + $0x4e0] sm:$0xff]  ;;  %534 = vmatpush.msra.mxu1 %v338_v31  ;;  %v283_v31 = vld [vmem:[%s1483_s7 + $0x148] sm:$0xff] }
  0x49   : > { %v462_v33 = vld [vmem:[%s1483_s7 + $0x6e0] sm:$0xff]  ;;  %564 = vmatpush.msra.mxu2 %v398_v32  ;;  %v347_v32 = vld [vmem:[%s1483_s7 + $0x348] sm:$0xff] }
  0x4a   : > { %v270_v34 = vld [vmem:[%s1483_s7 + $0xe0] sm:$0xff]  ;;  %593 = vmatpush.msra.mxu3 %v462_v33  ;;  %v403_v33 = vld [vmem:[%s1483_s7 + $0x508] sm:$0xff] }
  0x4b   : > { %v334_v35 = vld [vmem:[%s1483_s7 + $0x2e0] sm:$0xff]  ;;  %506 = vmatpush.msra.mxu0 %v270_v34  ;;  %v471_v34 = vld [vmem:[%s1483_s7 + $0x728] sm:$0xff] }
  0x4c   : > { %v394_v36 = vld [vmem:[%s1483_s7 + $0x4c0] sm:$0xff]  ;;  %535 = vmatpush.msra.mxu1 %v334_v35  ;;  %v1604_v35 = vld [vmem:[#allocation2 + $0x50] sm:$0xff] }
  0x4d   : > { %v458_v37 = vld [vmem:[%s1483_s7 + $0x6c0] sm:$0xff]  ;;  %565 = vmatpush.msra.mxu2 %v394_v36  ;;  %v279_v36 = vld [vmem:[%s1483_s7 + $0x128] sm:$0xff] }
  0x4e   : > { %v266_v38 = vld [vmem:[%s1483_s7 + $0xc0] sm:$0xff]  ;;  %594 = vmatpush.msra.mxu3 %v458_v37  ;;  %v343_v37 = vld [vmem:[%s1483_s7 + $0x328] sm:$0xff] }
  0x4f   : > { %v330_v39 = vld [vmem:[%s1483_s7 + $0x2c0] sm:$0xff]  ;;  %507 = vmatpush.msra.mxu0 %v266_v38  ;;  %v399_v38 = vld [vmem:[%s1483_s7 + $0x4e8] sm:$0xff] }
  0x50   : > { %v390_v40 = vld [vmem:[%s1483_s7 + $0x4a0] sm:$0xff]  ;;  %536 = vmatpush.msra.mxu1 %v330_v39  ;;  %v467_v39 = vld [vmem:[%s1483_s7 + $0x708] sm:$0xff] }
  0x51   : > { %v454_v41 = vld [vmem:[%s1483_s7 + $0x6a0] sm:$0xff]  ;;  %566 = vmatpush.msra.mxu2 %v390_v40  ;;  %v1611_v40 = vld [vmem:[#allocation2 + $0x58] sm:$0xff] }
  0x52   : > { %v262_v42 = vld [vmem:[%s1483_s7 + $0xa0] sm:$0xff]  ;;  %595 = vmatpush.msra.mxu3 %v454_v41  ;;  %v275_v41 = vld [vmem:[%s1483_s7 + $0x108] sm:$0xff] }
  0x53   : > { %v326_v43 = vld [vmem:[%s1483_s7 + $0x2a0] sm:$0xff]  ;;  %508 = vmatpush.msra.mxu0 %v262_v42  ;;  %v339_v42 = vld [vmem:[%s1483_s7 + $0x308] sm:$0xff] }
  0x54   : > { %v386_v44 = vld [vmem:[%s1483_s7 + $0x480] sm:$0xff]  ;;  %537 = vmatpush.msra.mxu1 %v326_v43  ;;  %v395_v43 = vld [vmem:[%s1483_s7 + $0x4c8] sm:$0xff] }
  0x55   : > { %v450_v45 = vld [vmem:[%s1483_s7 + $0x680] sm:$0xff]  ;;  %567 = vmatpush.msra.mxu2 %v386_v44  ;;  %v463_v44 = vld [vmem:[%s1483_s7 + $0x6e8] sm:$0xff] }
  0x56   : > { %v258_v46 = vld [vmem:[%s1483_s7 + $0x80] sm:$0xff]  ;;  %596 = vmatpush.msra.mxu3 %v450_v45 }
  0x57   : > { %v322_v47 = vld [vmem:[%s1483_s7 + $0x280] sm:$0xff]  ;;  %509 = vmatpush.msra.mxu0 %v258_v46  ;;  %v1620_v46 = vld [vmem:[#allocation2 + $0x48] sm:$0xff] }
  0x58   : > { %v382_v48 = vld [vmem:[%s1483_s7 + $0x460] sm:$0xff]  ;;  %538 = vmatpush.msra.mxu1 %v322_v47  ;;  %v271_v47 = vld [vmem:[%s1483_s7 + $0xe8] sm:$0xff] }
  0x59   : > { %v446_v49 = vld [vmem:[%s1483_s7 + $0x660] sm:$0xff]  ;;  %568 = vmatpush.msra.mxu2 %v382_v48  ;;  %v335_v48 = vld [vmem:[%s1483_s7 + $0x2e8] sm:$0xff] }
  0x5a   : > { %v254_v50 = vld [vmem:[%s1483_s7 + $0x60] sm:$0xff]  ;;  %597 = vmatpush.msra.mxu3 %v446_v49  ;;  %v391_v49 = vld [vmem:[%s1483_s7 + $0x4a8] sm:$0xff] }
  0x5b   : > { %v318_v51 = vld [vmem:[%s1483_s7 + $0x260] sm:$0xff]  ;;  %510 = vmatpush.msra.mxu0 %v254_v50  ;;  %v459_v50 = vld [vmem:[%s1483_s7 + $0x6c8] sm:$0xff] }
  0x5c   : > { %v378_v52 = vld [vmem:[%s1483_s7 + $0x440] sm:$0xff]  ;;  %539 = vmatpush.msra.mxu1 %v318_v51  ;;  %v267_v51 = vld [vmem:[%s1483_s7 + $0xc8] sm:$0xff] }
  0x5d   : > { %v442_v53 = vld [vmem:[%s1483_s7 + $0x640] sm:$0xff]  ;;  %569 = vmatpush.msra.mxu2 %v378_v52  ;;  %v331_v52 = vld [vmem:[%s1483_s7 + $0x2c8] sm:$0xff] }
  0x5e   : > { %v250_v54 = vld [vmem:[%s1483_s7 + $0x40] sm:$0xff]  ;;  %598 = vmatpush.msra.mxu3 %v442_v53  ;;  %v387_v53 = vld [vmem:[%s1483_s7 + $0x488] sm:$0xff] }
  0x5f   : > { %v314_v55 = vld [vmem:[%s1483_s7 + $0x240] sm:$0xff]  ;;  %511 = vmatpush.msra.mxu0 %v250_v54  ;;  %v455_v54 = vld [vmem:[%s1483_s7 + $0x6a8] sm:$0xff] }
  0x60   : > { %v374_v56 = vld [vmem:[%s1483_s7 + $0x420] sm:$0xff]  ;;  %540 = vmatpush.msra.mxu1 %v314_v55  ;;  %v1632_v55 = vld [vmem:[#allocation2 + $0x70] sm:$0xff] }
  0x61   : > { %v438_v57 = vld [vmem:[%s1483_s7 + $0x620] sm:$0xff]  ;;  %570 = vmatpush.msra.mxu2 %v374_v56  ;;  %v263_v56 = vld [vmem:[%s1483_s7 + $0xa8] sm:$0xff] }
  0x62   : > { %v246_v58 = vld [vmem:[%s1483_s7 + $0x20] sm:$0xff]  ;;  %599 = vmatpush.msra.mxu3 %v438_v57  ;;  %v327_v57 = vld [vmem:[%s1483_s7 + $0x2a8] sm:$0xff] }
  0x63   : > { %v310_v59 = vld [vmem:[%s1483_s7 + $0x220] sm:$0xff]  ;;  %512 = vmatpush.msra.mxu0 %v246_v58  ;;  %v383_v58 = vld [vmem:[%s1483_s7 + $0x468] sm:$0xff] }
  0x64   : > { %v370_v60 = vld [vmem:[%s1483_s7 + $0x400] sm:$0xff]  ;;  %541 = vmatpush.msra.mxu1 %v310_v59  ;;  %v451_v59 = vld [vmem:[%s1483_s7 + $0x688] sm:$0xff] }
  0x65   : > { %v434_v61 = vld [vmem:[%s1483_s7 + $0x600] sm:$0xff]  ;;  %571 = vmatpush.msra.mxu2 %v370_v60  ;;  %v1639_v60 = vld [vmem:[#allocation2 + $0x78] sm:$0xff] }
  0x66   : > { %600 = vmatpush.msra.mxu3 %v434_v61  ;;  %v242_v2 = vld [vmem:[%s1483_s7] sm:$0xff]  ;;  %572 = vmatmul.f32.vlgmr.msra.gmra.mxu2 %v1551_v62  ;;  %v259_v61 = vld [vmem:[%s1483_s7 + $0x88] sm:$0xff] }
  0x67   : > { %v306_v3 = vld [vmem:[%s1483_s7 + $0x200] sm:$0xff]  ;;  %601 = vmatmul.f32.vlgmr.msra.gmra.mxu3 %v1553_v63  ;;  %672 = vmatpush.msrb.mxu2 %v431_v0  ;;  %v323_v0 = vld [vmem:[%s1483_s7 + $0x288] sm:$0xff] }
  0x68   : > { %v1562_v5 = vld [vmem:[#allocation2] sm:$0xff]  ;;  %701 = vmatpush.msrb.mxu3 %v495_v1  ;;  %513 = vmatpush.msra.mxu0 %v242_v2  ;;  %v379_v1 = vld [vmem:[%s1483_s7 + $0x448] sm:$0xff] }
  0x69   : > { %542 = vmatpush.msra.mxu1 %v306_v3  ;;  %673 = vmatpush.msrb.mxu2 %v427_v4  ;;  %v1589_v25 = vld [vmem:[#allocation2 + $0x20] sm:$0xff]  ;;  %v447_v2 = vld [vmem:[%s1483_s7 + $0x668] sm:$0xff] }
  0x6a   : > { %514 = vmatmul.f32.vlgmr.msra.gmra.mxu0 %v1562_v5  ;;  %543 = vmatmul.f32.vlgmr.msra.gmra.mxu1 %v1564_v6  ;;  %v1617_v45 = vld [vmem:[#allocation2 + $0x40] sm:$0xff]  ;;  %v1648_v4 = vld [vmem:[#allocation2 + $0x68] sm:$0xff] }
  0x6b   : > { %614 = vmatpush.msrb.mxu0 %v303_v7  ;;  %643 = vmatpush.msrb.mxu1 %v367_v8  ;;  %v1645_v3 = vld [vmem:[#allocation2 + $0x60] sm:$0xff]  ;;  %v255_v7 = vld [vmem:[%s1483_s7 + $0x68] sm:$0xff] }
  0x6c   : > { %674 = vmatpush.msrb.mxu2 %v423_v9  ;;  %702 = vmatpush.msrb.mxu3 %v491_v10  ;;  %v319_v8 = vld [vmem:[%s1483_s7 + $0x268] sm:$0xff] }
  0x6d   : > { %615 = vmatpush.msrb.mxu0 %v299_v11  ;;  %644 = vmatpush.msrb.mxu1 %v363_v12  ;;  %v375_v9 = vld [vmem:[%s1483_s7 + $0x428] sm:$0xff] }
  0x6e   : > { %675 = vmatpush.msrb.mxu2 %v419_v13  ;;  %703 = vmatpush.msrb.mxu3 %v487_v14  ;;  %v443_v10 = vld [vmem:[%s1483_s7 + $0x648] sm:$0xff] }
  0x6f   : > { %575 = vmatmul.f32.gmra.mxu2 %v1576_v15  ;;  %616 = vmatpush.msrb.mxu0 %v295_v16  ;;  %v251_v11 = vld [vmem:[%s1483_s7 + $0x48] sm:$0xff] }
  0x70   : > { %645 = vmatpush.msrb.mxu1 %v359_v17  ;;  %676 = vmatpush.msrb.mxu2 %v415_v18  ;;  %v315_v12 = vld [vmem:[%s1483_s7 + $0x248] sm:$0xff] }
  0x71   : > { %704 = vmatpush.msrb.mxu3 %v483_v19  ;;  %617 = vmatpush.msrb.mxu0 %v291_v21  ;;  %v371_v13 = vld [vmem:[%s1483_s7 + $0x408] sm:$0xff]  ;;  %v432_v19 = vld [vmem:[%s1483_s7 + $0x5f0] sm:$0xff] }
  0x72   : > { %604 = vmatmul.f32.gmra.mxu3 %v1583_v20  ;;  %646 = vmatpush.msrb.mxu1 %v355_v22  ;;  %v439_v14 = vld [vmem:[%s1483_s7 + $0x628] sm:$0xff] }
  0x73   : > { %677 = vmatpush.msrb.mxu2 %v411_v23  ;;  %705 = vmatpush.msrb.mxu3 %v479_v24  ;;  %v247_v16 = vld [vmem:[%s1483_s7 + $0x28] sm:$0xff]  ;;  %v428_v23 = vld [vmem:[%s1483_s7 + $0x5d0] sm:$0xff] }
  0x74   : > { %517 = vmatmul.f32.gmra.mxu0 %v1589_v25  ;;  %546 = vmatmul.f32.gmra.mxu1 %v1592_v26  ;;  %v311_v17 = vld [vmem:[%s1483_s7 + $0x228] sm:$0xff]  ;;  %v496_v24 = vld [vmem:[%s1483_s7 + $0x7f0] sm:$0xff] }
  0x75   : > { %618 = vmatpush.msrb.mxu0 %v287_v27  ;;  %647 = vmatpush.msrb.mxu1 %v351_v28  ;;  %v435_v18 = vld [vmem:[%s1483_s7 + $0x608] sm:$0xff]  ;;  %v304_v27 = vld [vmem:[%s1483_s7 + $0x1f0] sm:$0xff] }
  0x76   : > { %678 = vmatpush.msrb.mxu2 %v407_v29  ;;  %706 = vmatpush.msrb.mxu3 %v475_v30  ;;  %v243_v21 = vld [vmem:[%s1483_s7 + $0x8] sm:$0xff]  ;;  %v368_v28 = vld [vmem:[%s1483_s7 + $0x3f0] sm:$0xff] }
  0x77   : > { %619 = vmatpush.msrb.mxu0 %v283_v31  ;;  %648 = vmatpush.msrb.mxu1 %v347_v32  ;;  %v307_v22 = vld [vmem:[%s1483_s7 + $0x208] sm:$0xff]  ;;  %v424_v29 = vld [vmem:[%s1483_s7 + $0x5b0] sm:$0xff] }
  0x78   : > { %679 = vmatpush.msrb.mxu2 %v403_v33  ;;  %707 = vmatpush.msrb.mxu3 %v471_v34  ;;  %v492_v30 = vld [vmem:[%s1483_s7 + $0x7d0] sm:$0xff] }
  0x79   : > { %578 = vmatmul.f32.gmra.mxu2 %v1604_v35  ;;  %620 = vmatpush.msrb.mxu0 %v279_v36  ;;  %v300_v31 = vld [vmem:[%s1483_s7 + $0x1d0] sm:$0xff] }
  0x7a   : > { %649 = vmatpush.msrb.mxu1 %v343_v37  ;;  %680 = vmatpush.msrb.mxu2 %v399_v38  ;;  %v364_v32 = vld [vmem:[%s1483_s7 + $0x3d0] sm:$0xff] }
  0x7b   : > { %708 = vmatpush.msrb.mxu3 %v467_v39  ;;  %621 = vmatpush.msrb.mxu0 %v275_v41  ;;  %v420_v33 = vld [vmem:[%s1483_s7 + $0x590] sm:$0xff] }
  0x7c   : > { %607 = vmatmul.f32.gmra.mxu3 %v1611_v40  ;;  %650 = vmatpush.msrb.mxu1 %v339_v42  ;;  %v488_v34 = vld [vmem:[%s1483_s7 + $0x7b0] sm:$0xff] }
  0x7d   : > { %681 = vmatpush.msrb.mxu2 %v395_v43  ;;  %709 = vmatpush.msrb.mxu3 %v463_v44  ;;  %v296_v36 = vld [vmem:[%s1483_s7 + $0x1b0] sm:$0xff] }
  0x7e   : > { %520 = vmatmul.f32.gmra.mxu0 %v1617_v45  ;;  %549 = vmatmul.f32.gmra.mxu1 %v1620_v46  ;;  %v360_v37 = vld [vmem:[%s1483_s7 + $0x3b0] sm:$0xff] }
  0x7f   : > { %622 = vmatpush.msrb.mxu0 %v271_v47  ;;  %651 = vmatpush.msrb.mxu1 %v335_v48  ;;  %v416_v38 = vld [vmem:[%s1483_s7 + $0x570] sm:$0xff] }
  0x80   : > { %682 = vmatpush.msrb.mxu2 %v391_v49  ;;  %710 = vmatpush.msrb.mxu3 %v459_v50  ;;  %v484_v39 = vld [vmem:[%s1483_s7 + $0x790] sm:$0xff] }
  0x81   : > { %623 = vmatpush.msrb.mxu0 %v267_v51  ;;  %652 = vmatpush.msrb.mxu1 %v331_v52  ;;  %v292_v41 = vld [vmem:[%s1483_s7 + $0x190] sm:$0xff] }
  0x82   : > { %683 = vmatpush.msrb.mxu2 %v387_v53  ;;  %711 = vmatpush.msrb.mxu3 %v455_v54  ;;  %v356_v42 = vld [vmem:[%s1483_s7 + $0x390] sm:$0xff] }
  0x83   : > { %581 = vmatmul.f32.gmra.mxu2 %v1632_v55  ;;  %624 = vmatpush.msrb.mxu0 %v263_v56  ;;  %v412_v43 = vld [vmem:[%s1483_s7 + $0x550] sm:$0xff] }
  0x84   : > { %653 = vmatpush.msrb.mxu1 %v327_v57  ;;  %684 = vmatpush.msrb.mxu2 %v383_v58  ;;  %v480_v44 = vld [vmem:[%s1483_s7 + $0x770] sm:$0xff] }
  0x85   : > { %712 = vmatpush.msrb.mxu3 %v451_v59  ;;  %625 = vmatpush.msrb.mxu0 %v259_v61  ;;  %v288_v47 = vld [vmem:[%s1483_s7 + $0x170] sm:$0xff] }
  0x86   : > { %610 = vmatmul.f32.gmra.mxu3 %v1639_v60  ;;  %654 = vmatpush.msrb.mxu1 %v323_v0  ;;  %v352_v48 = vld [vmem:[%s1483_s7 + $0x370] sm:$0xff] }
  0x87   : > { %685 = vmatpush.msrb.mxu2 %v379_v1  ;;  %713 = vmatpush.msrb.mxu3 %v447_v2  ;;  %v408_v49 = vld [vmem:[%s1483_s7 + $0x530] sm:$0xff] }
  0x88   : > { %523 = vmatmul.f32.gmra.mxu0 %v1645_v3  ;;  %552 = vmatmul.f32.gmra.mxu1 %v1648_v4  ;;  %v476_v50 = vld [vmem:[%s1483_s7 + $0x750] sm:$0xff] }
  0x89   : > { %626 = vmatpush.msrb.mxu0 %v255_v7  ;;  %655 = vmatpush.msrb.mxu1 %v319_v8  ;;  %v284_v51 = vld [vmem:[%s1483_s7 + $0x150] sm:$0xff] }
  0x8a   : > { %686 = vmatpush.msrb.mxu2 %v375_v9  ;;  %714 = vmatpush.msrb.mxu3 %v443_v10  ;;  %v348_v52 = vld [vmem:[%s1483_s7 + $0x350] sm:$0xff] }
  0x8b   : > { %627 = vmatpush.msrb.mxu0 %v251_v11  ;;  %656 = vmatpush.msrb.mxu1 %v315_v12  ;;  %v404_v53 = vld [vmem:[%s1483_s7 + $0x510] sm:$0xff] }
  0x8c   : > { %687 = vmatpush.msrb.mxu2 %v371_v13  ;;  %715 = vmatpush.msrb.mxu3 %v439_v14  ;;  %v472_v54 = vld [vmem:[%s1483_s7 + $0x730] sm:$0xff] }
  0x8d   : > { %628 = vmatpush.msrb.mxu0 %v247_v16  ;;  %657 = vmatpush.msrb.mxu1 %v311_v17  ;;  %v280_v56 = vld [vmem:[%s1483_s7 + $0x130] sm:$0xff] }
  0x8e   : > { %688 = vmatmul.f32.vlgmr.msrb.gmra.mxu2 %v1551_v62  ;;  %716 = vmatpush.msrb.mxu3 %v435_v18  ;;  %v344_v57 = vld [vmem:[%s1483_s7 + $0x330] sm:$0xff] }
  0x8f   : > { %788 = vmatpush.msra.mxu2 %v432_v19  ;;  %629 = vmatpush.msrb.mxu0 %v243_v21  ;;  %v400_v58 = vld [vmem:[%s1483_s7 + $0x4f0] sm:$0xff] }
  0x90   : > { %658 = vmatpush.msrb.mxu1 %v307_v22  ;;  %717 = vmatmul.f32.vlgmr.msrb.gmra.mxu3 %v1553_v63  ;;  %v468_v59 = vld [vmem:[%s1483_s7 + $0x710] sm:$0xff] }
  0x91   : > { %789 = vmatpush.msra.mxu2 %v428_v23  ;;  %817 = vmatpush.msra.mxu3 %v496_v24  ;;  %v276_v61 = vld [vmem:[%s1483_s7 + $0x110] sm:$0xff] }
  0x92   : > { %630 = vmatmul.f32.vlgmr.msrb.gmra.mxu0 %v1562_v5  ;;  %659 = vmatmul.f32.vlgmr.msrb.gmra.mxu1 %v1564_v6  ;;  %v340_v0 = vld [vmem:[%s1483_s7 + $0x310] sm:$0xff] }
  0x93   : > { %730 = vmatpush.msra.mxu0 %v304_v27  ;;  %759 = vmatpush.msra.mxu1 %v368_v28  ;;  %v396_v1 = vld [vmem:[%s1483_s7 + $0x4d0] sm:$0xff] }
  0x94   : > { %790 = vmatpush.msra.mxu2 %v424_v29  ;;  %818 = vmatpush.msra.mxu3 %v492_v30  ;;  %v464_v2 = vld [vmem:[%s1483_s7 + $0x6f0] sm:$0xff] }
  0x95   : > { %731 = vmatpush.msra.mxu0 %v300_v31  ;;  %760 = vmatpush.msra.mxu1 %v364_v32  ;;  %v272_v7 = vld [vmem:[%s1483_s7 + $0xf0] sm:$0xff] }
  0x96   : > { %791 = vmatpush.msra.mxu2 %v420_v33  ;;  %819 = vmatpush.msra.mxu3 %v488_v34  ;;  %v336_v8 = vld [vmem:[%s1483_s7 + $0x2f0] sm:$0xff] }
  0x97   : > { %691 = vmatmul.f32.gmra.mxu2 %v1576_v15  ;;  %732 = vmatpush.msra.mxu0 %v296_v36  ;;  %v392_v9 = vld [vmem:[%s1483_s7 + $0x4b0] sm:$0xff] }
  0x98   : > { %761 = vmatpush.msra.mxu1 %v360_v37  ;;  %792 = vmatpush.msra.mxu2 %v416_v38  ;;  %v460_v10 = vld [vmem:[%s1483_s7 + $0x6d0] sm:$0xff] }
  0x99   : > { %820 = vmatpush.msra.mxu3 %v484_v39  ;;  %733 = vmatpush.msra.mxu0 %v292_v41  ;;  %v268_v11 = vld [vmem:[%s1483_s7 + $0xd0] sm:$0xff]  ;;  %v433_v39 = vld [vmem:[%s1483_s7 + $0x5f8] sm:$0xff] }
  0x9a   : > { %720 = vmatmul.f32.gmra.mxu3 %v1583_v20  ;;  %762 = vmatpush.msra.mxu1 %v356_v42  ;;  %v332_v12 = vld [vmem:[%s1483_s7 + $0x2d0] sm:$0xff] }
  0x9b   : > { %793 = vmatpush.msra.mxu2 %v412_v43  ;;  %821 = vmatpush.msra.mxu3 %v480_v44  ;;  %v388_v13 = vld [vmem:[%s1483_s7 + $0x490] sm:$0xff]  ;;  %v429_v43 = vld [vmem:[%s1483_s7 + $0x5d8] sm:$0xff] }
  0x9c   : > { %633 = vmatmul.f32.gmra.mxu0 %v1589_v25  ;;  %662 = vmatmul.f32.gmra.mxu1 %v1592_v26  ;;  %v456_v14 = vld [vmem:[%s1483_s7 + $0x6b0] sm:$0xff]  ;;  %v497_v44 = vld [vmem:[%s1483_s7 + $0x7f8] sm:$0xff] }
  0x9d   : > { %734 = vmatpush.msra.mxu0 %v288_v47  ;;  %763 = vmatpush.msra.mxu1 %v352_v48  ;;  %v264_v16 = vld [vmem:[%s1483_s7 + $0xb0] sm:$0xff]  ;;  %v305_v47 = vld [vmem:[%s1483_s7 + $0x1f8] sm:$0xff] }
  0x9e   : > { %794 = vmatpush.msra.mxu2 %v408_v49  ;;  %822 = vmatpush.msra.mxu3 %v476_v50  ;;  %v328_v17 = vld [vmem:[%s1483_s7 + $0x2b0] sm:$0xff]  ;;  %v369_v48 = vld [vmem:[%s1483_s7 + $0x3f8] sm:$0xff] }
  0x9f   : > { %735 = vmatpush.msra.mxu0 %v284_v51  ;;  %764 = vmatpush.msra.mxu1 %v348_v52  ;;  %v384_v18 = vld [vmem:[%s1483_s7 + $0x470] sm:$0xff]  ;;  %v425_v49 = vld [vmem:[%s1483_s7 + $0x5b8] sm:$0xff] }
  0xa0   : > { %795 = vmatpush.msra.mxu2 %v404_v53  ;;  %823 = vmatpush.msra.mxu3 %v472_v54  ;;  %v452_v19 = vld [vmem:[%s1483_s7 + $0x690] sm:$0xff]  ;;  %v493_v50 = vld [vmem:[%s1483_s7 + $0x7d8] sm:$0xff] }
  0xa1   : > { %694 = vmatmul.f32.gmra.mxu2 %v1604_v35  ;;  %736 = vmatpush.msra.mxu0 %v280_v56  ;;  %v260_v21 = vld [vmem:[%s1483_s7 + $0x90] sm:$0xff]  ;;  %v301_v51 = vld [vmem:[%s1483_s7 + $0x1d8] sm:$0xff] }
  0xa2   : > { %765 = vmatpush.msra.mxu1 %v344_v57  ;;  %796 = vmatpush.msra.mxu2 %v400_v58  ;;  %v324_v22 = vld [vmem:[%s1483_s7 + $0x290] sm:$0xff]  ;;  %v365_v52 = vld [vmem:[%s1483_s7 + $0x3d8] sm:$0xff] }
  0xa3   : > { %824 = vmatpush.msra.mxu3 %v468_v59  ;;  %737 = vmatpush.msra.mxu0 %v276_v61  ;;  %v380_v23 = vld [vmem:[%s1483_s7 + $0x450] sm:$0xff]  ;;  %v421_v53 = vld [vmem:[%s1483_s7 + $0x598] sm:$0xff] }
  0xa4   : > { %723 = vmatmul.f32.gmra.mxu3 %v1611_v40  ;;  %766 = vmatpush.msra.mxu1 %v340_v0  ;;  %v448_v24 = vld [vmem:[%s1483_s7 + $0x670] sm:$0xff]  ;;  %v489_v54 = vld [vmem:[%s1483_s7 + $0x7b8] sm:$0xff] }
  0xa5   : > { %797 = vmatpush.msra.mxu2 %v396_v1  ;;  %825 = vmatpush.msra.mxu3 %v464_v2  ;;  %v256_v27 = vld [vmem:[%s1483_s7 + $0x70] sm:$0xff]  ;;  %v297_v56 = vld [vmem:[%s1483_s7 + $0x1b8] sm:$0xff] }
  0xa6   : > { %636 = vmatmul.f32.gmra.mxu0 %v1617_v45  ;;  %665 = vmatmul.f32.gmra.mxu1 %v1620_v46  ;;  %v320_v28 = vld [vmem:[%s1483_s7 + $0x270] sm:$0xff]  ;;  %v361_v57 = vld [vmem:[%s1483_s7 + $0x3b8] sm:$0xff] }
  0xa7   : > { %738 = vmatpush.msra.mxu0 %v272_v7  ;;  %767 = vmatpush.msra.mxu1 %v336_v8  ;;  %v376_v29 = vld [vmem:[%s1483_s7 + $0x430] sm:$0xff]  ;;  %v417_v58 = vld [vmem:[%s1483_s7 + $0x578] sm:$0xff] }
  0xa8   : > { %798 = vmatpush.msra.mxu2 %v392_v9  ;;  %826 = vmatpush.msra.mxu3 %v460_v10  ;;  %v444_v30 = vld [vmem:[%s1483_s7 + $0x650] sm:$0xff]  ;;  %v485_v59 = vld [vmem:[%s1483_s7 + $0x798] sm:$0xff] }
  0xa9   : > { %739 = vmatpush.msra.mxu0 %v268_v11  ;;  %768 = vmatpush.msra.mxu1 %v332_v12  ;;  %v252_v31 = vld [vmem:[%s1483_s7 + $0x50] sm:$0xff]  ;;  %v293_v61 = vld [vmem:[%s1483_s7 + $0x198] sm:$0xff] }
  0xaa   : > { %799 = vmatpush.msra.mxu2 %v388_v13  ;;  %827 = vmatpush.msra.mxu3 %v456_v14  ;;  %v316_v32 = vld [vmem:[%s1483_s7 + $0x250] sm:$0xff]  ;;  %v357_v0 = vld [vmem:[%s1483_s7 + $0x398] sm:$0xff] }
  0xab   : > { %697 = vmatmul.f32.gmra.mxu2 %v1632_v55  ;;  %740 = vmatpush.msra.mxu0 %v264_v16  ;;  %v372_v33 = vld [vmem:[%s1483_s7 + $0x410] sm:$0xff]  ;;  %v413_v1 = vld [vmem:[%s1483_s7 + $0x558] sm:$0xff] }
  0xac   : > { %769 = vmatpush.msra.mxu1 %v328_v17  ;;  %800 = vmatpush.msra.mxu2 %v384_v18  ;;  %v440_v34 = vld [vmem:[%s1483_s7 + $0x630] sm:$0xff]  ;;  %v481_v2 = vld [vmem:[%s1483_s7 + $0x778] sm:$0xff] }
  0xad   : > { %828 = vmatpush.msra.mxu3 %v452_v19  ;;  %741 = vmatpush.msra.mxu0 %v260_v21  ;;  %v248_v36 = vld [vmem:[%s1483_s7 + $0x30] sm:$0xff]  ;;  %v289_v7 = vld [vmem:[%s1483_s7 + $0x178] sm:$0xff] }
  0xae   : > { %726 = vmatmul.f32.gmra.mxu3 %v1639_v60  ;;  %770 = vmatpush.msra.mxu1 %v324_v22  ;;  %v312_v37 = vld [vmem:[%s1483_s7 + $0x230] sm:$0xff]  ;;  %v353_v8 = vld [vmem:[%s1483_s7 + $0x378] sm:$0xff] }
  0xaf   : > { %801 = vmatpush.msra.mxu2 %v380_v23  ;;  %829 = vmatpush.msra.mxu3 %v448_v24  ;;  %v436_v38 = vld [vmem:[%s1483_s7 + $0x610] sm:$0xff]  ;;  %v409_v9 = vld [vmem:[%s1483_s7 + $0x538] sm:$0xff] }
  0xb0   : > { %639 = vmatmul.f32.gmra.mxu0 %v1645_v3  ;;  %668 = vmatmul.f32.gmra.mxu1 %v1648_v4  ;;  %v244_v41 = vld [vmem:[%s1483_s7 + $0x10] sm:$0xff]  ;;  %v477_v10 = vld [vmem:[%s1483_s7 + $0x758] sm:$0xff] }
  0xb1   : > { %742 = vmatpush.msra.mxu0 %v256_v27  ;;  %771 = vmatpush.msra.mxu1 %v320_v28  ;;  %v308_v42 = vld [vmem:[%s1483_s7 + $0x210] sm:$0xff]  ;;  %v285_v11 = vld [vmem:[%s1483_s7 + $0x158] sm:$0xff] }
  0xb2   : > { %802 = vmatpush.msra.mxu2 %v376_v29  ;;  %830 = vmatpush.msra.mxu3 %v444_v30  ;;  %v349_v12 = vld [vmem:[%s1483_s7 + $0x358] sm:$0xff] }
  0xb3   : > { %743 = vmatpush.msra.mxu0 %v252_v31  ;;  %772 = vmatpush.msra.mxu1 %v316_v32  ;;  %v405_v13 = vld [vmem:[%s1483_s7 + $0x518] sm:$0xff] }
  0xb4   : > { %803 = vmatpush.msra.mxu2 %v372_v33  ;;  %831 = vmatpush.msra.mxu3 %v440_v34  ;;  %v473_v14 = vld [vmem:[%s1483_s7 + $0x738] sm:$0xff] }
  0xb5   : > { %744 = vmatpush.msra.mxu0 %v248_v36  ;;  %773 = vmatpush.msra.mxu1 %v312_v37  ;;  %v281_v16 = vld [vmem:[%s1483_s7 + $0x138] sm:$0xff] }
  0xb6   : > { %804 = vmatmul.f32.vlgmr.msra.gmra.mxu2 %v1551_v62  ;;  %832 = vmatpush.msra.mxu3 %v436_v38  ;;  %v345_v17 = vld [vmem:[%s1483_s7 + $0x338] sm:$0xff] }
  0xb7   : > { %904 = vmatpush.msrb.mxu2 %v433_v39  ;;  %745 = vmatpush.msra.mxu0 %v244_v41  ;;  %v401_v18 = vld [vmem:[%s1483_s7 + $0x4f8] sm:$0xff] }
  0xb8   : > { %774 = vmatpush.msra.mxu1 %v308_v42  ;;  %833 = vmatmul.f32.vlgmr.msra.gmra.mxu3 %v1553_v63  ;;  %v469_v19 = vld [vmem:[%s1483_s7 + $0x718] sm:$0xff] }
  0xb9   : > { %905 = vmatpush.msrb.mxu2 %v429_v43  ;;  %933 = vmatpush.msrb.mxu3 %v497_v44  ;;  %v277_v21 = vld [vmem:[%s1483_s7 + $0x118] sm:$0xff] }
  0xba   : > { %746 = vmatmul.f32.vlgmr.msra.gmra.mxu0 %v1562_v5  ;;  %775 = vmatmul.f32.vlgmr.msra.gmra.mxu1 %v1564_v6  ;;  %v341_v22 = vld [vmem:[%s1483_s7 + $0x318] sm:$0xff] }
  0xbb   : > { %846 = vmatpush.msrb.mxu0 %v305_v47  ;;  %875 = vmatpush.msrb.mxu1 %v369_v48  ;;  %v397_v23 = vld [vmem:[%s1483_s7 + $0x4d8] sm:$0xff] }
  0xbc   : > { %906 = vmatpush.msrb.mxu2 %v425_v49  ;;  %934 = vmatpush.msrb.mxu3 %v493_v50  ;;  %v465_v24 = vld [vmem:[%s1483_s7 + $0x6f8] sm:$0xff] }
  0xbd   : > { %847 = vmatpush.msrb.mxu0 %v301_v51  ;;  %876 = vmatpush.msrb.mxu1 %v365_v52  ;;  %v273_v27 = vld [vmem:[%s1483_s7 + $0xf8] sm:$0xff] }
  0xbe   : > { %907 = vmatpush.msrb.mxu2 %v421_v53  ;;  %935 = vmatpush.msrb.mxu3 %v489_v54  ;;  %v337_v28 = vld [vmem:[%s1483_s7 + $0x2f8] sm:$0xff] }
  0xbf   : > { %807 = vmatmul.f32.gmra.mxu2 %v1576_v15  ;;  %848 = vmatpush.msrb.mxu0 %v297_v56  ;;  %v393_v29 = vld [vmem:[%s1483_s7 + $0x4b8] sm:$0xff] }
  0xc0   : > { %877 = vmatpush.msrb.mxu1 %v361_v57  ;;  %908 = vmatpush.msrb.mxu2 %v417_v58  ;;  %v461_v30 = vld [vmem:[%s1483_s7 + $0x6d8] sm:$0xff] }
  0xc1   : > { %936 = vmatpush.msrb.mxu3 %v485_v59  ;;  %849 = vmatpush.msrb.mxu0 %v293_v61  ;;  %v269_v31 = vld [vmem:[%s1483_s7 + $0xd8] sm:$0xff] }
  0xc2   : > { %836 = vmatmul.f32.gmra.mxu3 %v1583_v20  ;;  %878 = vmatpush.msrb.mxu1 %v357_v0  ;;  %v333_v32 = vld [vmem:[%s1483_s7 + $0x2d8] sm:$0xff] }
  0xc3   : > { %909 = vmatpush.msrb.mxu2 %v413_v1  ;;  %937 = vmatpush.msrb.mxu3 %v481_v2  ;;  %v389_v33 = vld [vmem:[%s1483_s7 + $0x498] sm:$0xff] }
  0xc4   : > { %749 = vmatmul.f32.gmra.mxu0 %v1589_v25  ;;  %778 = vmatmul.f32.gmra.mxu1 %v1592_v26  ;;  %v457_v34 = vld [vmem:[%s1483_s7 + $0x6b8] sm:$0xff] }
  0xc5   : > { %850 = vmatpush.msrb.mxu0 %v289_v7  ;;  %879 = vmatpush.msrb.mxu1 %v353_v8  ;;  %v265_v36 = vld [vmem:[%s1483_s7 + $0xb8] sm:$0xff] }
  0xc6   : > { %910 = vmatpush.msrb.mxu2 %v409_v9  ;;  %938 = vmatpush.msrb.mxu3 %v477_v10  ;;  %v329_v37 = vld [vmem:[%s1483_s7 + $0x2b8] sm:$0xff] }
  0xc7   : > { %851 = vmatpush.msrb.mxu0 %v285_v11  ;;  %880 = vmatpush.msrb.mxu1 %v349_v12  ;;  %v385_v38 = vld [vmem:[%s1483_s7 + $0x478] sm:$0xff] }
  0xc8   : > { %911 = vmatpush.msrb.mxu2 %v405_v13  ;;  %939 = vmatpush.msrb.mxu3 %v473_v14  ;;  %v453_v39 = vld [vmem:[%s1483_s7 + $0x698] sm:$0xff] }
  0xc9   : > { %810 = vmatmul.f32.gmra.mxu2 %v1604_v35  ;;  %852 = vmatpush.msrb.mxu0 %v281_v16  ;;  %v261_v41 = vld [vmem:[%s1483_s7 + $0x98] sm:$0xff] }
  0xca   : > { %881 = vmatpush.msrb.mxu1 %v345_v17  ;;  %912 = vmatpush.msrb.mxu2 %v401_v18  ;;  %v325_v42 = vld [vmem:[%s1483_s7 + $0x298] sm:$0xff] }
  0xcb   : > { %940 = vmatpush.msrb.mxu3 %v469_v19  ;;  %853 = vmatpush.msrb.mxu0 %v277_v21  ;;  %v381_v43 = vld [vmem:[%s1483_s7 + $0x458] sm:$0xff] }
  0xcc   : > { %839 = vmatmul.f32.gmra.mxu3 %v1611_v40  ;;  %882 = vmatpush.msrb.mxu1 %v341_v22  ;;  %v449_v44 = vld [vmem:[%s1483_s7 + $0x678] sm:$0xff] }
  0xcd   : > { %913 = vmatpush.msrb.mxu2 %v397_v23  ;;  %941 = vmatpush.msrb.mxu3 %v465_v24  ;;  %v257_v47 = vld [vmem:[%s1483_s7 + $0x78] sm:$0xff] }
  0xce   : > { %752 = vmatmul.f32.gmra.mxu0 %v1617_v45  ;;  %781 = vmatmul.f32.gmra.mxu1 %v1620_v46  ;;  %v321_v48 = vld [vmem:[%s1483_s7 + $0x278] sm:$0xff] }
  0xcf   : > { %854 = vmatpush.msrb.mxu0 %v273_v27  ;;  %883 = vmatpush.msrb.mxu1 %v337_v28  ;;  %v377_v49 = vld [vmem:[%s1483_s7 + $0x438] sm:$0xff] }
  0xd0   : > { %914 = vmatpush.msrb.mxu2 %v393_v29  ;;  %942 = vmatpush.msrb.mxu3 %v461_v30  ;;  %v445_v50 = vld [vmem:[%s1483_s7 + $0x658] sm:$0xff] }
  0xd1   : > { %855 = vmatpush.msrb.mxu0 %v269_v31  ;;  %884 = vmatpush.msrb.mxu1 %v333_v32  ;;  %v253_v51 = vld [vmem:[%s1483_s7 + $0x58] sm:$0xff] }
  0xd2   : > { %915 = vmatpush.msrb.mxu2 %v389_v33  ;;  %943 = vmatpush.msrb.mxu3 %v457_v34  ;;  %v317_v52 = vld [vmem:[%s1483_s7 + $0x258] sm:$0xff] }
  0xd3   : > { %813 = vmatmul.f32.gmra.mxu2 %v1632_v55  ;;  %856 = vmatpush.msrb.mxu0 %v265_v36  ;;  %v373_v53 = vld [vmem:[%s1483_s7 + $0x418] sm:$0xff] }
  0xd4   : > { %885 = vmatpush.msrb.mxu1 %v329_v37  ;;  %916 = vmatpush.msrb.mxu2 %v385_v38  ;;  %v441_v54 = vld [vmem:[%s1483_s7 + $0x638] sm:$0xff] }
  0xd5   : > { %944 = vmatpush.msrb.mxu3 %v453_v39  ;;  %857 = vmatpush.msrb.mxu0 %v261_v41  ;;  %v249_v56 = vld [vmem:[%s1483_s7 + $0x38] sm:$0xff] }
  0xd6   : > { %842 = vmatmul.f32.gmra.mxu3 %v1639_v60  ;;  %886 = vmatpush.msrb.mxu1 %v325_v42  ;;  %v313_v57 = vld [vmem:[%s1483_s7 + $0x238] sm:$0xff] }
  0xd7   : > { %917 = vmatpush.msrb.mxu2 %v381_v43  ;;  %945 = vmatpush.msrb.mxu3 %v449_v44  ;;  %v437_v58 = vld [vmem:[%s1483_s7 + $0x618] sm:$0xff] }
  0xd8   : > { %755 = vmatmul.f32.gmra.mxu0 %v1645_v3  ;;  %784 = vmatmul.f32.gmra.mxu1 %v1648_v4  ;;  %v245_v59 = vld [vmem:[%s1483_s7 + $0x18] sm:$0xff] }
  0xd9   : > { %858 = vmatpush.msrb.mxu0 %v257_v47  ;;  %887 = vmatpush.msrb.mxu1 %v321_v48  ;;  %v309_v61 = vld [vmem:[%s1483_s7 + $0x218] sm:$0xff] }
  0xda   : > { %918 = vmatpush.msrb.mxu2 %v377_v49  ;;  %946 = vmatpush.msrb.mxu3 %v445_v50 }
  0xdb   : > { %859 = vmatpush.msrb.mxu0 %v253_v51  ;;  %888 = vmatpush.msrb.mxu1 %v317_v52 }
  0xdc   : > { %919 = vmatpush.msrb.mxu2 %v373_v53  ;;  %947 = vmatpush.msrb.mxu3 %v441_v54 }
  0xdd   : > { %860 = vmatpush.msrb.mxu0 %v249_v56  ;;  %889 = vmatpush.msrb.mxu1 %v313_v57 }
  0xde   : > { %920 = vmatmul.f32.vlgmr.msrb.gmra.mxu2 %v1551_v62  ;;  %948 = vmatpush.msrb.mxu3 %v437_v58 }
  0xdf   : > { %861 = vmatpush.msrb.mxu0 %v245_v59  ;;  %890 = vmatpush.msrb.mxu1 %v309_v61 }
  0xe0   : > { %949 = vmatmul.f32.vlgmr.msrb.gmra.mxu3 %v1553_v63  ;;  %862 = vmatmul.f32.vlgmr.msrb.gmra.mxu0 %v1562_v5 }
  0xe1   : > { %891 = vmatmul.f32.vlgmr.msrb.gmra.mxu1 %v1564_v6 }
  0xe6   : > { %923 = vmatmul.f32.gmra.mxu2 %v1576_v15 }
  0xe7   : > { %v515_v0 = vpop.f32.mrf.mxu0  ;;  %v544_v1 = vpop.f32.mrf.mxu1 }
  0xe8   : > { %952 = vmatmul.f32.gmra.mxu3 %v1583_v20  ;;  %865 = vmatmul.f32.gmra.mxu0 %v1589_v25  ;;  %v545_v62 = vadd.f32 %v544_v1, %v515_v0 }
  0xe9   : > { %894 = vmatmul.f32.gmra.mxu1 %v1592_v26  ;;  %v573_v2 = vpop.f32.mrf.mxu2 }
  0xea   : > { %v602_v7 = vpop.f32.mrf.mxu3  ;;  %v574_v8 = vadd.f32 %v573_v2, %v545_v62 }
  0xec   : > { %v603_v63 = vadd.f32 %v602_v7, %v574_v8 }
  0xee   : > { %926 = vmatmul.f32.gmra.mxu2 %v1604_v35  ;;  %962 = vst [vmem:[%s1835_s19] sm:$0xff] %v603_v63 }
  0xf0   : > { %955 = vmatmul.f32.gmra.mxu3 %v1611_v40  ;;  %868 = vmatmul.f32.gmra.mxu0 %v1617_v45 }
  0xf1   : > { %897 = vmatmul.f32.gmra.mxu1 %v1620_v46  ;;  %v518_v5 = vpop.f32.mrf.mxu0  ;;  %v547_v6 = vpop.f32.mrf.mxu1 }
  0xf2   : > { %v576_v15 = vpop.f32.mrf.mxu2  ;;  %v548_v20 = vadd.f32 %v547_v6, %v518_v5 }
  0xf4   : > { %v577_v25 = vadd.f32 %v576_v15, %v548_v20 }
  0xf5   : > { %v605_v26 = vpop.f32.mrf.mxu3 }
  0xf6   : > { %929 = vmatmul.f32.gmra.mxu2 %v1632_v55  ;;  %v606_v35 = vadd.f32 %v605_v26, %v577_v25 }
  0xf8   : > { %958 = vmatmul.f32.gmra.mxu3 %v1639_v60  ;;  %871 = vmatmul.f32.gmra.mxu0 %v1645_v3  ;;  %966 = vst [vmem:[%s1835_s19 + $0x20] sm:$0xff] %v606_v35 }
  0xf9   : > { %900 = vmatmul.f32.gmra.mxu1 %v1648_v4 }
  0xfb   : > { %v521_v40 = vpop.f32.mrf.mxu0  ;;  %v550_v45 = vpop.f32.mrf.mxu1 }
  0xfc   : > { %v579_v46 = vpop.f32.mrf.mxu2  ;;  %v551_v9 = vadd.f32 %v550_v45, %v521_v40 }
  0xfe   : > { %v580_v10 = vadd.f32 %v579_v46, %v551_v9 }
  0xff   : > { %v608_v11 = vpop.f32.mrf.mxu3 }
 0x100   : > { %v609_v12 = vadd.f32 %v608_v11, %v580_v10 }
 0x102   : > { %970 = vst [vmem:[%s1835_s19 + $0x40] sm:$0xff] %v609_v12 }
 0x105   : > { %v524_v13 = vpop.f32.mrf.mxu0  ;;  %v553_v55 = vpop.f32.mrf.mxu1 }
 0x106   : > { %v582_v14 = vpop.f32.mrf.mxu2  ;;  %v554_v16 = vadd.f32 %v553_v55, %v524_v13 }
 0x108   : > { %v583_v60 = vadd.f32 %v582_v14, %v554_v16 }
 0x109   : > { %v611_v17 = vpop.f32.mrf.mxu3 }
 0x10a   : > { %v612_v3 = vadd.f32 %v611_v17, %v583_v60 }
 0x10c   : > { %974 = vst [vmem:[%s1835_s19 + $0x60] sm:$0xff] %v612_v3 }
 0x10f   : > { %v631_v4 = vpop.f32.mrf.mxu0  ;;  %v660_v18 = vpop.f32.mrf.mxu1 }
 0x110   : > { %v661_v19 = vadd.f32 %v660_v18, %v631_v4 }
 0x111   : > { %v689_v21 = vpop.f32.mrf.mxu2 }
 0x112   : > { %v690_v22 = vadd.f32 %v689_v21, %v661_v19 }
 0x113   : > { %v718_v23 = vpop.f32.mrf.mxu3 }
 0x114   : > { %v719_v24 = vadd.f32 %v718_v23, %v690_v22 }
 0x116   : > { %963 = vst [vmem:[%s1835_s19 + $0x8] sm:$0xff] %v719_v24 }
 0x119   : > { %v634_v27 = vpop.f32.mrf.mxu0  ;;  %v663_v28 = vpop.f32.mrf.mxu1 }
 0x11a   : > { %v692_v29 = vpop.f32.mrf.mxu2  ;;  %v664_v30 = vadd.f32 %v663_v28, %v634_v27 }
 0x11c   : > { %v693_v31 = vadd.f32 %v692_v29, %v664_v30 }
 0x11d   : > { %v721_v32 = vpop.f32.mrf.mxu3 }
 0x11e   : > { %v722_v33 = vadd.f32 %v721_v32, %v693_v31 }
 0x120   : > { %967 = vst [vmem:[%s1835_s19 + $0x28] sm:$0xff] %v722_v33 }
 0x123   : > { %v637_v34 = vpop.f32.mrf.mxu0  ;;  %v666_v36 = vpop.f32.mrf.mxu1 }
 0x124   : > { %v695_v37 = vpop.f32.mrf.mxu2  ;;  %v667_v38 = vadd.f32 %v666_v36, %v637_v34 }
 0x126   : > { %v696_v39 = vadd.f32 %v695_v37, %v667_v38 }
 0x127   : > { %v724_v41 = vpop.f32.mrf.mxu3 }
 0x128   : > { %v725_v42 = vadd.f32 %v724_v41, %v696_v39 }
 0x12a   : > { %971 = vst [vmem:[%s1835_s19 + $0x48] sm:$0xff] %v725_v42 }
 0x12d   : > { %v640_v43 = vpop.f32.mrf.mxu0  ;;  %v669_v44 = vpop.f32.mrf.mxu1 }
 0x12e   : > { %v698_v47 = vpop.f32.mrf.mxu2  ;;  %v670_v48 = vadd.f32 %v669_v44, %v640_v43 }
 0x130   : > { %v699_v49 = vadd.f32 %v698_v47, %v670_v48 }
 0x131   : > { %v727_v50 = vpop.f32.mrf.mxu3 }
 0x132   : > { %v728_v51 = vadd.f32 %v727_v50, %v699_v49 }
 0x134   : > { %975 = vst [vmem:[%s1835_s19 + $0x68] sm:$0xff] %v728_v51 }
 0x137   : > { %v747_v52 = vpop.f32.mrf.mxu0  ;;  %v776_v53 = vpop.f32.mrf.mxu1 }
 0x138   : > { %v777_v54 = vadd.f32 %v776_v53, %v747_v52 }
 0x139   : > { %v805_v56 = vpop.f32.mrf.mxu2 }
 0x13a   : > { %v806_v57 = vadd.f32 %v805_v56, %v777_v54 }
 0x13b   : > { %v834_v58 = vpop.f32.mrf.mxu3 }
 0x13c   : > { %v835_v59 = vadd.f32 %v834_v58, %v806_v57 }
 0x13e   : > { %964 = vst [vmem:[%s1835_s19 + $0x10] sm:$0xff] %v835_v59 }
 0x141   : > { %v750_v61 = vpop.f32.mrf.mxu0  ;;  %v779_v0 = vpop.f32.mrf.mxu1 }
 0x142   : > { %v808_v1 = vpop.f32.mrf.mxu2  ;;  %v780_v62 = vadd.f32 %v779_v0, %v750_v61 }
 0x144   : > { %v809_v2 = vadd.f32 %v808_v1, %v780_v62 }
 0x145   : > { %v837_v7 = vpop.f32.mrf.mxu3 }
 0x146   : > { %v838_v8 = vadd.f32 %v837_v7, %v809_v2 }
 0x148   : > { %968 = vst [vmem:[%s1835_s19 + $0x30] sm:$0xff] %v838_v8 }
 0x14b   : > { %v753_v63 = vpop.f32.mrf.mxu0  ;;  %v782_v5 = vpop.f32.mrf.mxu1 }
 0x14c   : > { %v811_v6 = vpop.f32.mrf.mxu2  ;;  %v783_v15 = vadd.f32 %v782_v5, %v753_v63 }
 0x14e   : > { %v812_v20 = vadd.f32 %v811_v6, %v783_v15 }
 0x14f   : > { %v840_v25 = vpop.f32.mrf.mxu3 }
 0x150   : > { %v841_v26 = vadd.f32 %v840_v25, %v812_v20 }
 0x152   : > { %972 = vst [vmem:[%s1835_s19 + $0x50] sm:$0xff] %v841_v26 }
 0x155   : > { %v756_v35 = vpop.f32.mrf.mxu0  ;;  %v785_v40 = vpop.f32.mrf.mxu1 }
 0x156   : > { %v814_v45 = vpop.f32.mrf.mxu2  ;;  %v786_v46 = vadd.f32 %v785_v40, %v756_v35 }
 0x158   : > { %v815_v9 = vadd.f32 %v814_v45, %v786_v46 }
 0x159   : > { %v843_v10 = vpop.f32.mrf.mxu3 }
 0x15a   : > { %v844_v11 = vadd.f32 %v843_v10, %v815_v9 }
 0x15c   : > { %976 = vst [vmem:[%s1835_s19 + $0x70] sm:$0xff] %v844_v11 }
 0x15d   : > { %v863_v12 = vpop.f32.mrf.mxu0 }
 0x15e   : > { %v892_v13 = vpop.f32.mrf.mxu1 }
 0x15f   : > { %v893_v55 = vadd.f32 %v892_v13, %v863_v12 }
 0x161   : > { %v921_v14 = vpop.f32.mrf.mxu2 }
 0x162   : > { %v922_v16 = vadd.f32 %v921_v14, %v893_v55 }
 0x163   : > { %v950_v60 = vpop.f32.mrf.mxu3 }
 0x164   : > { %v951_v17 = vadd.f32 %v950_v60, %v922_v16 }
 0x165   : > { %v866_v3 = vpop.f32.mrf.mxu0 }
 0x166   : > { %965 = vst [vmem:[%s1835_s19 + $0x18] sm:$0xff] %v951_v17  ;;  %v895_v4 = vpop.f32.mrf.mxu1 }
 0x167   : > { %v896_v18 = vadd.f32 %v895_v4, %v866_v3 }
 0x169   : > { %v924_v19 = vpop.f32.mrf.mxu2 }
 0x16a   : > { %v925_v21 = vadd.f32 %v924_v19, %v896_v18 }
 0x16b   : > { %v953_v22 = vpop.f32.mrf.mxu3 }
 0x16c   : > { %v954_v23 = vadd.f32 %v953_v22, %v925_v21 }
 0x16d   : > { %v869_v24 = vpop.f32.mrf.mxu0 }
 0x16e   : > { %969 = vst [vmem:[%s1835_s19 + $0x38] sm:$0xff] %v954_v23  ;;  %v898_v27 = vpop.f32.mrf.mxu1 }
 0x16f   : > { %v899_v28 = vadd.f32 %v898_v27, %v869_v24 }
 0x171   : > { %v927_v29 = vpop.f32.mrf.mxu2 }
 0x172   : > { %v928_v30 = vadd.f32 %v927_v29, %v899_v28 }
 0x173   : > { %v956_v31 = vpop.f32.mrf.mxu3 }
 0x174   : > { %v957_v32 = vadd.f32 %v956_v31, %v928_v30 }
 0x175   : > { %v872_v33 = vpop.f32.mrf.mxu0 }
 0x176   : > { %973 = vst [vmem:[%s1835_s19 + $0x58] sm:$0xff] %v957_v32  ;;  %v901_v34 = vpop.f32.mrf.mxu1 }
 0x177   : > { %v902_v36 = vadd.f32 %v901_v34, %v872_v33 }
 0x179   : > { %v930_v37 = vpop.f32.mrf.mxu2 }
 0x17a   : > { %v931_v38 = vadd.f32 %v930_v37, %v902_v36 }
 0x17b   : > { %v959_v39 = vpop.f32.mrf.mxu3 }
 0x17c   : > { %v960_v41 = vadd.f32 %v959_v39, %v931_v38 }
 0x17e   : > { %977 = vst [vmem:[%s1835_s19 + $0x78] sm:$0xff] %v960_v41 }
 0x17f   : > { %1289 = shalt.err (!%p1286_p12)
}
 0x180   : > { %s1354_s30 = smov 512   ;;  %s1355_s6 = smov 1536  }
 0x181   : > { %s1356_s7 = smov 32  }
 0x182   : > { %1129 = dma.vmem_to_hbm [thread:$0]  (%p1453_p3), %s995_s16, 2048, %s997_s21, %s979_s12, %s1354_s30, %s1355_s6, %s1356_s7  }
 0x183 PF: > { %p1146_p13 = scmp.ge.s32.totalorder %s1348_s14, 2  ;;  %s1011_s17 = sand.u32 1, %s1328_s9  }
 0x184   : > { %s1012_s19 = scalar_lea.sflag [#allocation4], %s1011_s17 }
 0x185   : > { %p1140_p0 = pnand %p1146_p13, %p1421_p6 }
 0x187   : > { %p1141_p5 = pneg %p1140_p0 }
 0x189   : > { %1323 = dma.done.wait (%p1141_p5), %s1012_s19, 2048  }
 0x18a   : > { %1325 = vsyncadd (%p1141_p5), %s1012_s19, 4294965248  ;;  %s19_s14 = sadd.s32 1, %s1348_s14   ;;  %s1910_s9 = smov %s1332_s10 }
 0x18b   : > { %p16_p7 = scmp.ge.s32.totalorder %s19_s14, 5   ;;  %s1911_s10 = smov %s1336_s11 }
 0x18c   : > { %s1912_s11 = smov %s1462_s8  ;;  %s1913_s12 = smov %s1344_s13 }
 0x18d   : > { %s1914_s13 = smov %s1916_s29  ;;  %18 = sbr.rel (!%p16_p7) target bundleno = 7 (0x7), region = 79 }
 0x192   :  { %1018 = vsyncpa [#allocation3], 1 }
 0x193   :  { %1020 = vsyncpa [#allocation3 + $0x1], 1 }
 0x194   :  { %1021 = vsyncpa [#allocation6], 1 }
 0x195   :  { %1023 = vsyncpa [#allocation6 + $0x1], 1 }
 0x196   :  { %1024 = vsyncpa [#allocation4], 1 }
 0x197   :  { %1026 = vsyncpa [#allocation4 + $0x1], 1 }

</bundles_post_ra>
